<compile_context>
chip_gen: v7x
topology: tpu7x:2x2x1
jax: 0.10.0
libtpu: 0.0.40
codegen_flags: <defaults>
</compile_context>

<pallas_src>
import numpy as np
import jax
import jax.numpy as jnp
from jax.experimental import pallas as pl
from jax.experimental.pallas import tpu as pltpu

NEG_SLOPE = 0.2  # LeakyReLU negative slope (alpha)


def sa_attn_kernel(z_ref, elt_ref, ert_ref, res_ref, o_ref):
    """Fused GAT attention for one block of destination nodes, all heads.

    z_ref   : (H, F+1, N)  bf16   per-head z^T with a trailing all-ones row
                                  (that row accumulates the softmax denominator
                                  on the MXU, in f32).  Block-invariant.
    elt_ref : (H, N)       f32/bf16  el^T for every source node. Block-invariant.
    ert_ref : (H, TN)      f32/bf16  er^T for this destination block.
    res_ref : (TN, H*F)    f32    residual projection for this block.
    o_ref   : (TN, H*F)    f32    lane-dense output slab.
    """
    H, Fp1, N = z_ref.shape
    F = Fp1 - 1
    TN = o_ref.shape[0]

    # e[h, u, v] = el[u, h] + er[v, h]; LeakyReLU; softmax over sources u.
    logits = elt_ref[...][:, :, None] + ert_ref[...][:, None, :]      # (H, N, TN)
    logits = jnp.maximum(logits, NEG_SLOPE * logits)                  # LeakyReLU
    m = jnp.max(logits, axis=1, keepdims=True)                        # (H, 1, TN)
    p = jnp.exp(logits - m).astype(jnp.bfloat16)                      # unnormalized

    # (H, F+1, N) @ (H, N, TN) -> (H, F+1, TN): rows 0..F-1 are the unnormalized
    # per-head outputs (transposed), row F is the softmax denominator.  Every
    # MXU pass has lane width TN; accumulation is f32.
    acc = jnp.einsum('hfn,hnv->hfv', z_ref[...], p,
                     preferred_element_type=jnp.float32)              # (H, F+1, TN)

    # Normalize AFTER the matmul (H*F*TN multiplies instead of H*N*TN).
    inv = pl.reciprocal(acc[:, F:, :], approx=False)                  # (H, 1, TN)
    out_t = (acc[:, :F, :] * inv).reshape(H * F, TN)                  # (HF, TN)

    # Single XLU transpose to the lane-dense (TN, H*F) slab + fused residual.
    o_ref[...] = (jnp.transpose(out_t) + res_ref[...]).astype(o_ref.dtype)


def _tpu_vmem_capacity_bytes():
    try:
        return int(pltpu.get_tpu_info().vmem_capacity_bytes)
    except Exception:
        return 64 << 20          # conservative (v7x-sized) fallback


def _has_bf16_vector_units():
    # bf16 VPU/EUP paths exist on v6e / v7x; not on v5e and older generations.
    try:
        kind = jax.devices()[0].device_kind.lower()
    except Exception:
        return False
    return not any(t in kind for t in ("v2", "v3", "v4", "v5"))


def sa_layer_forward(x, wfc, attn_l, attn_r, wres):
    """x: (N, Din); wfc/wres: (H, Din, F); attn_l/attn_r: (H, 1, F).
    Returns (N, H*F) matching SALayer (agg_mode='flatten', residual=True)."""
    N, Din = x.shape
    H, _, F = wfc.shape
    HF = H * F

    # ---- projections hoisted out of the kernel (single XLA GEMMs) -----------
    # Per-head z^T (H, F, N) + an appended all-ones row -> (H, F+1, N): the
    # ones row makes the aggregation matmul also emit the softmax denominator.
    z_t = jnp.einsum('nd,hdf->hfn', x, wfc)
    z_aug = jnp.concatenate([z_t, jnp.ones((H, 1, N), z_t.dtype)], axis=1)
    # attn_l / attn_r folded into the fc weight: el = x @ (Wfc . attn_l), etc.
    wl = jnp.einsum('hdf,hf->dh', wfc, attn_l[:, 0, :])
    wr = jnp.einsum('hdf,hf->dh', wfc, attn_r[:, 0, :])
    sm_dtype = jnp.bfloat16 if _has_bf16_vector_units() else jnp.float32
    elt = jnp.transpose(x @ wl).astype(sm_dtype)                      # (H, N)
    ert = jnp.transpose(x @ wr).astype(sm_dtype)                      # (H, N)
    res = x @ jnp.transpose(wres, (1, 0, 2)).reshape(Din, HF)         # (N, HF) f32
    z_b = z_aug.astype(jnp.bfloat16)                                  # MXU operand

    # ---- destination-row tiling ---------------------------------------------
    vmem_cap = _tpu_vmem_capacity_bytes()
    if N <= 512:
        TN = N                                         # single full-dim block
    else:
        TN = 512 if vmem_cap >= (96 << 20) else 256    # bigger tiles on 128 MiB parts
    grid = (pl.cdiv(N, TN),)                           # ragged last block is masked
    # TODO(synk): for very large N (when the (H, N, TN) logits slab no longer fits
    # ~0.85*VMEM, hit much earlier on v7x's 64 MiB) add flash-style online-softmax
    # tiling over the source axis inside the kernel.

    # ---- generation-aware scoped-VMEM budget --------------------------------
    sm_b = 2 if sm_dtype == jnp.bfloat16 else 4
    est = (2 * H * (F + 1) * N              # z^T (bf16, single-buffered)
           + sm_b * H * N                   # el^T (single-buffered)
           + 2 * sm_b * H * TN              # er^T block (double-buffered)
           + 2 * 4 * TN * HF                # residual block (double-buffered)
           + 2 * 4 * TN * HF                # output block (double-buffered)
           + 3 * sm_b * H * N * TN          # logits / exp temporaries
           + 2 * H * N * TN                 # bf16 probabilities (MXU operand)
           + 4 * H * (F + 1) * TN           # f32 matmul accumulator
           + 3 * 4 * TN * HF)               # normalize / transpose / add temps
    vmem_limit = min(int(0.85 * vmem_cap),
                     max(32 << 20, int(1.4 * est) + (2 << 20)))

    grid_spec = pltpu.PrefetchScalarGridSpec(
        num_scalar_prefetch=0,
        grid=grid,
        in_specs=[
            # Block-invariant inputs: single-buffered (no pipelining benefit).
            pl.BlockSpec((H, F + 1, N), lambda i: (0, 0, 0),
                         pipeline_mode=pl.Buffered(1)),
            pl.BlockSpec((H, N), lambda i: (0, 0),
                         pipeline_mode=pl.Buffered(1)),
            # Per-destination-block inputs (default double-buffering).
            pl.BlockSpec((H, TN), lambda i: (0, i)),
            pl.BlockSpec((TN, HF), lambda i: (i, 0)),
        ],
        out_specs=pl.BlockSpec((TN, HF), lambda i: (i, 0)),
    )

    return pl.pallas_call(
        sa_attn_kernel,
        out_shape=jax.ShapeDtypeStruct((N, HF), jnp.float32),
        grid_spec=grid_spec,
        compiler_params=pltpu.CompilerParams(
            dimension_semantics=("parallel",),
            vmem_limit_bytes=vmem_limit),
    )(z_b, elt, ert, res)


def reference_forward(x, wfc, attn_l, attn_r, wres):
    """Pure-JAX f32 reference with identical semantics (sanity check)."""
    N = x.shape[0]
    H, _, F = wfc.shape
    z = jnp.einsum('nd,hdf->nhf', x, wfc)                      # (N, H, F)
    el = jnp.sum(z * attn_l[:, 0, :][None], axis=-1)           # (N, H)
    er = jnp.sum(z * attn_r[:, 0, :][None], axis=-1)           # (N, H)
    e = el[None, :, :] + er[:, None, :]                        # (dst, src, H)
    e = jnp.where(e > 0, e, NEG_SLOPE * e)
    a = jax.nn.softmax(e, axis=1)                              # softmax over sources
    out = jnp.einsum('vuh,uhf->vhf', a, z)                     # (N, H, F)
    res = jnp.einsum('nd,hdf->nhf', x, wres)
    return (out + res).reshape(N, H * F)


if __name__ == "__main__":
    N, IN_FEATS, OUT_FEATS, NUM_HEADS = 8, 32, 16, 4

    key = jax.random.PRNGKey(0)
    k_x, k_fc, k_al, k_ar, k_res = jax.random.split(key, 5)

    x = jax.random.normal(k_x, (N, IN_FEATS), dtype=jnp.float32)

    # PyTorch parameter shapes:
    #   fc.weight / res_fc.weight : (H*F, Din) -> stored here as (H, Din, F)
    #   attn_l / attn_r           : (1, H, F)  -> stored here as (H, 1, F)
    def make_proj(k):
        w_torch = jax.random.normal(k, (NUM_HEADS * OUT_FEATS, IN_FEATS),
                                    dtype=jnp.float32) * 0.1
        # y = x @ W^T ; column h*F+f of (N, H*F) == head h, feat f after .view
        return jnp.transpose(
            w_torch.T.reshape(IN_FEATS, NUM_HEADS, OUT_FEATS), (1, 0, 2))

    wfc = make_proj(k_fc)
    wres = make_proj(k_res)
    attn_l = jax.random.normal(k_al, (NUM_HEADS, 1, OUT_FEATS), dtype=jnp.float32) * 0.1
    attn_r = jax.random.normal(k_ar, (NUM_HEADS, 1, OUT_FEATS), dtype=jnp.float32) * 0.1

    out = jax.block_until_ready(sa_layer_forward(x, wfc, attn_l, attn_r, wres))
    ref = reference_forward(x, wfc, attn_l, attn_r, wres)

    assert out.shape == (N, NUM_HEADS * OUT_FEATS)
    # Tolerance: MXU operands (z, probabilities) are bf16 with f32 accumulation,
    # and softmax elementwise math runs in bf16 on v6e/v7x.
    np.testing.assert_allclose(np.asarray(out), np.asarray(ref),
                               rtol=5e-2, atol=5e-2)
    print("KERNEL_OK")
</pallas_src>

<mosaic_0001>
module attributes {stable_mosaic.version = 11 : i64} {
  func.func @sa_attn_kernel(%arg0: i32, %arg1: memref<4x17x8xbf16, #tpu.memory_space<vmem>>, %arg2: memref<4x8xbf16, #tpu.memory_space<vmem>>, %arg3: memref<4x8xbf16, #tpu.memory_space<vmem>>, %arg4: memref<8x64xf32, #tpu.memory_space<vmem>>, %arg5: memref<8x64xf32, #tpu.memory_space<vmem>>) attributes {dimension_semantics = [#tpu.dimension_semantics<parallel>], iteration_bounds = array<i64: 1>, scalar_prefetch = 0 : i64, scratch_operands = 0 : i64, tpu.core_type = #tpu.core_type<tc>, window_params = [{pipeline_mode = #tpu.pipeline_mode<synchronous>, transform_indices = @transform_0, window_bounds = array<i64: 4, 17, 8>}, {pipeline_mode = #tpu.pipeline_mode<synchronous>, transform_indices = @transform_1, window_bounds = array<i64: 4, 8>}, {transform_indices = @transform_2, window_bounds = array<i64: 4, 8>}, {transform_indices = @transform_3, window_bounds = array<i64: 8, 64>}, {transform_indices = @transform_4, window_bounds = array<i64: 8, 64>}]} {
    %c0 = arith.constant 0 : index
    %c0_0 = arith.constant 0 : index
    %0 = vector.load %arg2[%c0, %c0_0] : memref<4x8xbf16, #tpu.memory_space<vmem>>, vector<4x8xbf16>
    %1 = vector.shape_cast %0 : vector<4x8xbf16> to vector<4x8x1xbf16>
    %c0_1 = arith.constant 0 : index
    %c0_2 = arith.constant 0 : index
    %2 = vector.load %arg3[%c0_1, %c0_2] : memref<4x8xbf16, #tpu.memory_space<vmem>>, vector<4x8xbf16>
    %3 = vector.shape_cast %2 : vector<4x8xbf16> to vector<4x1x8xbf16>
    %4 = vector.broadcast %1 : vector<4x8x1xbf16> to vector<4x8x8xbf16>
    %5 = vector.broadcast %3 : vector<4x1x8xbf16> to vector<4x8x8xbf16>
    %6 = arith.addf %4, %5 : vector<4x8x8xbf16>
    %cst = arith.constant 2.001950e-01 : bf16
    %7 = vector.broadcast %cst : bf16 to vector<4x8x8xbf16>
    %8 = arith.mulf %7, %6 : vector<4x8x8xbf16>
    %9 = arith.maximumf %6, %8 : vector<4x8x8xbf16>
    %cst_3 = arith.constant dense<0xFF80> : vector<4x8xbf16>
    %10 = vector.multi_reduction <maximumf>, %9, %cst_3 [1] : vector<4x8x8xbf16> to vector<4x8xbf16>
    %11 = vector.shape_cast %10 : vector<4x8xbf16> to vector<4x1x8xbf16>
    %12 = vector.broadcast %11 : vector<4x1x8xbf16> to vector<4x8x8xbf16>
    %13 = arith.subf %9, %12 : vector<4x8x8xbf16>
    %14 = math.exp %13 : vector<4x8x8xbf16>
    %c0_4 = arith.constant 0 : index
    %c0_5 = arith.constant 0 : index
    %c0_6 = arith.constant 0 : index
    %15 = vector.load %arg1[%c0_4, %c0_5, %c0_6] : memref<4x17x8xbf16, #tpu.memory_space<vmem>>, vector<4x17x8xbf16>
    "tpu.trace_start"() <{level = 10 : i32, message = "hfn,hnv->hfv"}> : () -> ()
    %cst_7 = arith.constant dense<0.000000e+00> : vector<4x17x8xf32>
    %16 = tpu.matmul %15, %14, %cst_7 {dimension_numbers = #tpu.dot_dimension_numbers<[2], [1], [1], [2], [0, 0, 0, 1, 1, 2], [0], [0]>} : vector<4x17x8xbf16>, vector<4x8x8xbf16>, vector<4x17x8xf32> -> vector<4x17x8xf32>
    "tpu.trace_stop"() : () -> ()
    %17 = vector.extract_strided_slice %16 {offsets = [0, 16, 0], sizes = [4, 1, 8], strides = [1, 1, 1]} : vector<4x17x8xf32> to vector<4x1x8xf32>
    %18 = tpu.reciprocal %17 : vector<4x1x8xf32> -> vector<4x1x8xf32>
    %19 = vector.extract_strided_slice %16 {offsets = [0, 0, 0], sizes = [4, 16, 8], strides = [1, 1, 1]} : vector<4x17x8xf32> to vector<4x16x8xf32>
    %20 = vector.broadcast %18 : vector<4x1x8xf32> to vector<4x16x8xf32>
    %21 = arith.mulf %19, %20 : vector<4x16x8xf32>
    %22 = vector.shape_cast %21 : vector<4x16x8xf32> to vector<64x8xf32>
    %23 = tpu.transpose %22, [1, 0] : vector<64x8xf32> -> vector<8x64xf32>
    %c0_8 = arith.constant 0 : index
    %c0_9 = arith.constant 0 : index
    %24 = vector.load %arg4[%c0_8, %c0_9] : memref<8x64xf32, #tpu.memory_space<vmem>>, vector<8x64xf32>
    %25 = arith.addf %23, %24 : vector<8x64xf32>
    %c0_10 = arith.constant 0 : index
    %c0_11 = arith.constant 0 : index
    %26 = vector.load %arg5[%c0_10, %c0_11] : memref<8x64xf32, #tpu.memory_space<vmem>>, vector<8x64xf32>
    tpu.vector_store %arg5[%c0_10, %c0_11], %25 {strides = array<i32>} : memref<8x64xf32, #tpu.memory_space<vmem>>, vector<8x64xf32>,
    return
  }
  func.func @transform_0(%arg0: i32) -> (i32, i32, i32) {
    %c0_i32 = arith.constant 0 : i32
    %c0_i32_0 = arith.constant 0 : i32
    %c0_i32_1 = arith.constant 0 : i32
    %c0_i32_2 = arith.constant 0 : i32
    return %c0_i32, %c0_i32_0, %c0_i32_1 : i32, i32, i32
  }
  func.func @transform_1(%arg0: i32) -> (i32, i32) {
    %c0_i32 = arith.constant 0 : i32
    %c0_i32_0 = arith.constant 0 : i32
    %c0_i32_1 = arith.constant 0 : i32
    return %c0_i32, %c0_i32_0 : i32, i32
  }
  func.func @transform_2(%arg0: i32) -> (i32, i32) {
    %c0_i32 = arith.constant 0 : i32
    %c0_i32_0 = arith.constant 0 : i32
    return %c0_i32, %arg0 : i32, i32
  }
  func.func @transform_3(%arg0: i32) -> (i32, i32) {
    %c0_i32 = arith.constant 0 : i32
    %c0_i32_0 = arith.constant 0 : i32
    return %arg0, %c0_i32 : i32, i32
  }
  func.func @transform_4(%arg0: i32) -> (i32, i32) {
    %c0_i32 = arith.constant 0 : i32
    %c0_i32_0 = arith.constant 0 : i32
    return %arg0, %c0_i32 : i32, i32
  }
}

</mosaic_0001>

<bundles_post_ra>
// kernel: tpu_custom_call.1
= control target key start
LH: loop header
LB: loop body
LE: loop exit
PB: predicated region body
PF: predicated region fallthrough
CT: control target
= control target key end

     0   :  { %v25_v1 = vlaneseq  ;;  %s768_s0 = inlined_call_operand.vmem [shape: bf16[4,17,8], index: 0, kind: input, shape index: {}]   ;;  %s769_s1 = inlined_call_operand.vmem [shape: bf16[4,8], index: 1, kind: input, shape index: {}]   ;;  %s770_s2 = inlined_call_operand.vmem [shape: bf16[4,8], index: 2, kind: input, shape index: {}]   ;;  %s771_s3 = inlined_call_operand.vmem [shape: f32[8,64], index: 3, kind: input, shape index: {}]   ;;  %s772_s4 = inlined_call_operand.hbm [shape: f32[8,64], index: 4, kind: output, shape index: {}]  }
   0x1   :  { %v21_v0 = vld [vmem:[%s769_s1] sm:$0x3] }
   0x2   :  { %v32_v2 = vshrl.u32 %v21_v0, 16  ;;  %v23_v3 = vpack.i.b16 %v21_v0, %v21_v0  ;;  %v26_v4 = vshrl.u32 %v25_v1, 7 }
   0x4   :  { %v690_v5 = vsub.s32 0, %v26_v4  ;;  %v44_v6 = vsub.s32 1, %v26_v4  ;;  %v33_v7 = vpack.i.b16 %v32_v2, %v32_v2 }
   0x6   :  { %v45_v8 = vrot.slane %v23_v3, %v44_v6  ;;  %v28_v9 = vrot.slane %v23_v3, %v690_v5 }
   0x7   :  { %9 = vsyncpa [#allocation3], 0  ;;  %v52_v10 = vrot.slane %v33_v7, %v44_v6  ;;  %v38_v11 = vrot.slane %v33_v7, %v690_v5  ;;  %v613_v12 = vld [vmem:[%s768_s0] sm:$0xff]   ;;  %vm220_vm0 = vcmask 64512   ;;  %v615_v13 = vld [vmem:[%s768_s0 + $0xc] sm:$0xff]   ;;  %vm130_vm1 = vcmask 60416  }
   0x8   :  { %47 = vbcast.lane.c.b16.xlu1 %v45_v8, 256  ;;  %30 = vbcast.lane.c.b16.xlu0 %v28_v9, 256  ;;  %v552_v14 = vld.sshfl [vmem:[%s770_s2] sm:$0x11 pattern:$0x75316420] }
   0x9   :  { %585 = vmatprep.mubr.msk.bf16.mxu0 %vm220_vm0, %v613_v12  ;;  %591 = vmatprep.mubr.msk.bf16.mxu1 %vm220_vm0, %v615_v13  ;;  %v65_v15 = vcombine.high %v552_v14, %v552_v14  ;;  %v553_v17 = vpack.i.b16 %v552_v14, %v552_v14  ;;  %v67_v19 = vunpack.i.h.s16 %v552_v14  ;;  %vm227_vm2 = vcmask 1043456   ;;  %s661_s8 = smov [#allocation2]  }
   0xa   :  { %s544_s9 = sshll.u32 %s661_s8, 4  ;;  %vm536_vm3 = vcmask 523264   ;;  %s545_s9 = int_to_ptr.vmem [resolvable:$true] %s544_s9 }
   0xb   :  { %v554_v16 = vpack.i.b16 %v65_v15, %v65_v15  ;;  %v69_v18 = vunpack.i.h.s16 %v65_v15  ;;  %v77_v21 = vrot.slane %v553_v17, %v690_v5  ;;  %v71_v23 = vpack.i.b16 %v67_v19, %v67_v19  ;;  %s637_s10 = scalar_lea.vmem %s545_s9, 128  ;;  %p642_p1 = scmp.lt.s32.totalorder %s545_s9, %s545_s9 }
   0xc   :  { %54 = vbcast.lane.c.b16.xlu1 %v52_v10, 256  ;;  %40 = vbcast.lane.c.b16.xlu0 %v38_v11, 256  ;;  %p638_p0 = scmp.ne.s32.totalorder %s545_s9, %s637_s10  ;;  %p643_p2 = scmp.lt.s32.totalorder %s637_s10, %s637_s10 }
   0xd   :  { %v85_v20 = vrot.slane %v554_v16, %v690_v5  ;;  %v73_v22 = vpack.i.b16 %v69_v18, %v69_v18  ;;  %v91_v25 = vpack.i.b16 %v77_v21, %v77_v21  ;;  %v81_v27 = vrot.slane %v71_v23, %v690_v5 }
   0xe   :  { %p644_p3 = por %p643_p2, %p642_p1 }
   0xf   :  { %v105_v24 = vpack.i.b16 %v85_v20, %v85_v20  ;;  %v89_v26 = vrot.slane %v73_v22, %v690_v5  ;;  %v96_v29 = vrot.slane %v91_v25, %v690_v5  ;;  %v98_v31 = vpack.i.b16 %v81_v27, %v81_v27 }
  0x10   :  { %p645_p4 = pnand %p644_p3, %p638_p0 }
  0x11   :  { %v110_v28 = vrot.slane %v105_v24, %v690_v5  ;;  %v112_v30 = vpack.i.b16 %v89_v26, %v89_v26  ;;  %v103_v37 = vrot.slane %v98_v31, %v690_v5 }
  0x13   :  { %v117_v36 = vrot.slane %v112_v30, %v690_v5 }
  0x7a   :  { %v48_v32 = vpop.permute.xlu1 %47  ;;  %v31_v33 = vpop.permute.xlu0 %30 }
  0x7b   :  { %v120_v34 = vadd.bf16 %v110_v28, %v48_v32  ;;  %v118_v35 = vadd.bf16 %v96_v29, %v31_v33 }
  0x7d   :  { %v124_v38 = vmul.bf16 1045249613, %v120_v34  ;;  %v122_v39 = vmul.bf16 1045249613, %v118_v35 }
  0x7e   :  { %v55_v40 = vpop.permute.xlu1 %54  ;;  %v41_v41 = vpop.permute.xlu0 %40 }
  0x7f   :  { %v128_v42 = vmax.bf16 %v124_v38, %v120_v34  ;;  %v126_v43 = vmax.bf16 %v122_v39, %v118_v35  ;;  %v121_v44 = vadd.bf16 %v117_v36, %v55_v40  ;;  %v119_v45 = vadd.bf16 %v103_v37, %v41_v41  ;;  %v614_v41 = vld [vmem:[%s768_s0 + $0x8] ss:$0 sps:$4 sm:$0x11]  }
  0x81   :  { %v159_v46 = vsel %vm130_vm1, %v128_v42, 4286644096  ;;  %v133_v47 = vsel %vm130_vm1, %v126_v43, 4286644096  ;;  %v125_v48 = vmul.bf16 1045249613, %v121_v44 }
  0x82   :  { %v161_v49 = vunpack.i.l.bf16 %v159_v46  ;;  %v162_v50 = vunpack.i.h.bf16 %v159_v46  ;;  %v135_v51 = vunpack.i.l.bf16 %v133_v47  ;;  %v136_v52 = vunpack.i.h.bf16 %v133_v47  ;;  %v616_v47 = vld [vmem:[%s768_s0 + $0x14] ss:$0 sps:$4 sm:$0x11]  }
  0x83   :  { %v129_v53 = vmax.bf16 %v125_v48, %v121_v44  ;;  %v123_v54 = vmul.bf16 1045249613, %v119_v45 }
  0x84   :  { %v163_v55 = vmax.f32 %v161_v49, %v162_v50  ;;  %v137_v56 = vmax.f32 %v135_v51, %v136_v52  ;;  %v619_v49 = vld [vmem:[%s768_s0 + $0x24] sm:$0xff]   ;;  %v618_v50 = vld [vmem:[%s768_s0 + $0x20] ss:$0 sps:$4 sm:$0x11]  }
  0x85   :  { %v172_v57 = vsel %vm130_vm1, %v129_v53, 4286644096  ;;  %v127_v58 = vmax.bf16 %v123_v54, %v119_v45  ;;  %v620_v52 = vld [vmem:[%s768_s0 + $0x2c] ss:$0 sps:$4 sm:$0x11]  }
  0x86   :  { %v164_v59 = vrot.slane %v163_v55, 4  ;;  %v138_v60 = vrot.slane %v137_v56, 4  ;;  %v174_v61 = vunpack.i.l.bf16 %v172_v57  ;;  %v175_v62 = vunpack.i.h.bf16 %v172_v57 }
  0x87   :  { %v146_v63 = vsel %vm130_vm1, %v127_v58, 4286644096 }
  0x88   :  { %v165_v0 = vmax.f32 %v163_v55, %v164_v59  ;;  %v139_v1 = vmax.f32 %v137_v56, %v138_v60  ;;  %v176_v2 = vmax.f32 %v174_v61, %v175_v62  ;;  %v148_v3 = vunpack.i.l.bf16 %v146_v63 }
  0x89   :  { %v149_v4 = vunpack.i.h.bf16 %v146_v63 }
  0x8a   :  { %v166_v6 = vrot.slane %v165_v0, 2  ;;  %v140_v7 = vrot.slane %v139_v1, 2  ;;  %v177_v8 = vrot.slane %v176_v2, 4 }
  0x8b   :  { %v150_v9 = vmax.f32 %v148_v3, %v149_v4 }
  0x8c   :  { %v167_v10 = vmax.f32 %v165_v0, %v166_v6  ;;  %v141_v11 = vmax.f32 %v139_v1, %v140_v7  ;;  %v178_v12 = vmax.f32 %v176_v2, %v177_v8 }
  0x8d   :  { %v151_v13 = vrot.slane %v150_v9, 4 }
  0x8e   :  { %v168_v14 = vrot.slane %v167_v10, 1  ;;  %v142_v15 = vrot.slane %v141_v11, 1  ;;  %v179_v16 = vrot.slane %v178_v12, 2 }
  0x8f   :  { %v152_v17 = vmax.f32 %v150_v9, %v151_v13 }
  0x90   :  { %v169_v18 = vmax.f32 %v167_v10, %v168_v14  ;;  %v143_v19 = vmax.f32 %v141_v11, %v142_v15  ;;  %v180_v20 = vmax.f32 %v178_v12, %v179_v16 }
  0x91   :  { %v153_v21 = vrot.slane %v152_v17, 2 }
  0x92   :  { %v170_v22 = vpack.i.bf16 %v169_v18, %v169_v18  ;;  %v144_v23 = vpack.i.bf16 %v143_v19, %v143_v19  ;;  %v181_v24 = vrot.slane %v180_v20, 1 }
  0x93   :  { %v154_v25 = vmax.f32 %v152_v17, %v153_v21 }
  0x94   :  { %v186_v26 = vsub.bf16 %v128_v42, %v170_v22  ;;  %v184_v27 = vsub.bf16 %v126_v43, %v144_v23  ;;  %v182_v28 = vmax.f32 %v180_v20, %v181_v24  ;;  %v617_v43 = vld [vmem:[%s768_s0 + $0x18] sm:$0xff]   ;;  %v534_v22 = vld [vmem:[%s771_s3] sm:$0xff] }
  0x95   :  { %v155_v29 = vrot.slane %v154_v25, 1 }
  0x96   :  { %v189_v30 = vmul.bf16 1069105081, %v184_v27  ;;  %v183_v31 = vpack.i.bf16 %v182_v28, %v182_v28  ;;  %v195_v32 = vmul.bf16 1069105081, %v186_v26 }
  0x97   :  { %v156_v33 = vmax.f32 %v154_v25, %v155_v29 }
  0x98   :  { %621 = vpow.bf16 %v189_v30  ;;  %v187_v34 = vsub.bf16 %v129_v53, %v183_v31 }
  0x99   :  { %v157_v35 = vpack.i.bf16 %v156_v33, %v156_v33  ;;  %623 = vpow.bf16 %v195_v32 }
  0x9a   :  { %v198_v37 = vmul.bf16 1069105081, %v187_v34 }
  0x9b   :  { %v185_v36 = vsub.bf16 %v127_v58, %v157_v35 }
  0x9d   :  { %v192_v38 = vmul.bf16 1069105081, %v185_v36 }
  0x9f   :  { %625 = vpow.bf16 %v192_v38 }
  0xa0   :  { %627 = vpow.bf16 %v198_v37 }
  0xa3   :  { %v622_v39 = vpop.eup %621 }
  0xa4   :  { %607 = vmatprep.subr.msk.bf16.mxu0 %vm227_vm2, %v622_v39  ;;  %v229_v40 = vsel %vm227_vm2, %v622_v39, 0  ;;  %v624_v42 = vpop.eup %623 }
  0xa5   :  { %584 = vmatpush3.bf16.msra.mxu0 %v229_v40  ;;  %v359_v44 = vsel %vm227_vm2, %v624_v42, 0 }
  0xa6   :  { %609 = vmatprep.subr.msk.bf16.mxu0 %vm227_vm2, %v624_v42 }
  0xa8   :  { %586 = vmatmul.mubr.msk.bf16.vlgmr.msra.gmra.mrb[0].mxu0 %vm220_vm0, %v614_v41 }
  0xa9   :  { %596 = vmatpush3.bf16.msra.mxu0 %v359_v44  ;;  %597 = vmatprep.mubr.msk.bf16.mxu0 %vm220_vm0, %v617_v43 }
  0xaa   :  { %v626_v45 = vpop.eup %625 }
  0xab   :  { %608 = vmatprep.subr.msk.bf16.mxu1 %vm227_vm2, %v626_v45  ;;  %v294_v46 = vsel %vm227_vm2, %v626_v45, 0  ;;  %v628_v48 = vpop.eup %627 }
  0xac   :  { %590 = vmatpush3.bf16.msra.mxu1 %v294_v46  ;;  %v424_v51 = vsel %vm227_vm2, %v628_v48, 0 }
  0xad   :  { %610 = vmatprep.subr.msk.bf16.mxu1 %vm227_vm2, %v628_v48 }
  0xaf   :  { %592 = vmatmul.mubr.msk.bf16.vlgmr.msra.gmra.mrb[0].mxu1 %vm220_vm0, %v616_v47 }
  0xb0   :  { %602 = vmatpush3.bf16.msra.mxu1 %v424_v51  ;;  %603 = vmatprep.mubr.msk.bf16.mxu1 %vm220_vm0, %v619_v49 }
  0xb1   :  { %598 = vmatmul.mubr.msk.bf16.vlgmr.msra.gmra.mrb[4].mxu0 %vm220_vm0, %v618_v50 }
  0xb7   :  { %604 = vmatmul.mubr.msk.bf16.vlgmr.msra.gmra.mrb[4].mxu1 %vm220_vm0, %v620_v52 }
 0x17b   :  { %v587_v53 = vpop.f32.mrb[0].mxu0 }
 0x17c   :  { %629 = vrcp.f32 %v587_v53  ;;  %v265_v54 = vpop.f32.mrb[1].mxu0 }
 0x17d   :  { %v588_v55 = vpop.f32.mrb[2].mxu0 }
 0x17e   :  { %v268_v56 = vpop.f32.mrb[3].mxu0 }
 0x182   :  { %v593_v57 = vpop.f32.mrb[0].mxu1 }
 0x183   :  { %631 = vrcp.f32 %v593_v57  ;;  %v330_v58 = vpop.f32.mrb[1].mxu1 }
 0x184   :  { %v594_v59 = vpop.f32.mrb[2].mxu1  ;;  %v599_v60 = vpop.f32.mrb[4].mxu0 }
 0x185   :  { %v333_v61 = vpop.f32.mrb[3].mxu1  ;;  %633 = vrcp.f32 %v599_v60  ;;  %v395_v62 = vpop.f32.mrb[5].mxu0 }
 0x186   :  { %v600_v63 = vpop.f32.mrb[6].mxu0  ;;  %v630_v0 = vpop.eup %629 }
 0x187   :  { %v398_v1 = vpop.f32.mrb[7].mxu0  ;;  %v481_v2 = vrot.slane %v630_v0, %v690_v5 }
 0x189   :  { %v494_v3 = vmul.f32 %v481_v2, %v265_v54  ;;  %v495_v4 = vmul.f32 %v481_v2, %v268_v56 }
 0x18a   :  { %v605_v6 = vpop.f32.mrb[4].mxu1 }
 0x18b   :  { %635 = vrcp.f32 %v605_v6  ;;  %v460_v7 = vpop.f32.mrb[5].mxu1  ;;  %502 = vxpose.xlu0.b32.start [1/8] (short) (narrow) %v494_v3, 8 }
 0x18c   :  { %v606_v8 = vpop.f32.mrb[6].mxu1 }
 0x18d   :  { %v632_v9 = vpop.eup %631  ;;  %v463_v10 = vpop.f32.mrb[7].mxu1 }
 0x18e   :  { %v485_v11 = vrot.slane %v632_v9, %v690_v5 }
 0x18f   :  { %v634_v12 = vpop.eup %633  ;;  %503 = vxpose.xlu0.b32.cont [2/8] (short) (narrow) %v495_v4, 8 }
 0x190   :  { %v496_v13 = vmul.f32 %v485_v11, %v330_v58  ;;  %v497_v14 = vmul.f32 %v485_v11, %v333_v61  ;;  %v489_v15 = vrot.slane %v634_v12, %v690_v5 }
 0x192   :  { %v498_v16 = vmul.f32 %v489_v15, %v395_v62  ;;  %v499_v17 = vmul.f32 %v489_v15, %v398_v1 }
 0x193   :  { %504 = vxpose.xlu0.b32.cont [3/8] (short) (narrow) %v496_v13, 8 }
 0x195   :  { %v636_v18 = vpop.eup %635 }
 0x196   :  { %v493_v19 = vrot.slane %v636_v18, %v690_v5 }
 0x197   :  { %505 = vxpose.xlu0.b32.cont [4/8] (short) (narrow) %v497_v14, 8 }
 0x198   :  { %v500_v20 = vmul.f32 %v493_v19, %v460_v7  ;;  %v501_v21 = vmul.f32 %v493_v19, %v463_v10 }
 0x19b   :  { %506 = vxpose.xlu0.b32.cont [5/8] (short) (narrow) %v498_v16, 8 }
 0x19f   :  { %507 = vxpose.xlu0.b32.cont [6/8] (short) (narrow) %v499_v17, 8 }
 0x1a3   :  { %508 = vxpose.xlu0.b32.cont [7/8] (short) (narrow) %v500_v20, 8 }
 0x1a7   :  { %509 = vxpose.xlu0.b32.end [8/8] (short) (narrow) %v501_v21, 8 }
 0x20b   :  { %v518_v23 = vpop.trf.xlu0 }
 0x20c   :  { %v535_v24 = vadd.f32 %v534_v22, %v518_v23 }
 0x20e   :  { %537 = vst.msk [vmem:[#allocation2] sm:$0xff] %vm536_vm3, %v535_v24 }
 0x20f   :  { %648 = shalt.err (!%p645_p4)
}
 0x210   :  { %s649_s13 = scalar_lea.hbm %s772_s4, 128 }
 0x211   :  { %p650_p5 = scmp.ne.s32.totalorder %s772_s4, %s649_s13  ;;  %p653_p6 = scmp.lt.u32.totalorder %s649_s13, %s772_s4 }
 0x213   :  { %p655_p7 = pnand %p653_p6, %p650_p5 }
 0x215   :  { %658 = shalt.err (!%p655_p7)
}
 0x216   :  { %547 = dma.vmem_to_hbm [thread:$0]  %s545_s9, 128, %s772_s4, [#allocation3]  }
 0x217   :  { %659 = dma.done.wait [#allocation3], 128  }
 0x218   :  { %660 = vsyncadd [#allocation3], 4294967168 }
 0x219   :  { %551 = vsyncpa [#allocation3], 1 }

</bundles_post_ra>
